<compile_context>
chip_gen: v5e
topology: v5e:2x2
jax: 0.10.0
libtpu: 0.0.40
codegen_flags: <defaults>
</compile_context>

<pallas_src>
import jax
import jax.numpy as jnp
from jax.experimental import pallas as pl
from jax.experimental.pallas import tpu as pltpu


def _make_kernel(bf16_matmul):
    def kernel(x_ref, w_ref, y_ref, yneg_ref, out_ref):
        # In-kernel casts: inputs arrive in their native dtype (no extra HBM passes).
        if bf16_matmul:
            a = x_ref[...].astype(jnp.bfloat16)
            b = w_ref[...].astype(jnp.bfloat16)
        else:  # strict f32 parity with torch; free perf-wise (kernel is HBM-bound).
            a = x_ref[...].astype(jnp.float32)
            b = w_ref[...].astype(jnp.float32)
        xw = jnp.dot(a, b, preferred_element_type=jnp.float32)          # (tb, feat) f32

        # VPU multiply + XLU lane reduce in f32 (upcast bf16 y/y_neg at load; v5e has no
        # native bf16 VPU math).  keepdims keeps a clean (tb, 1) sublane layout.
        y = y_ref[...].astype(jnp.float32)
        yneg = yneg_ref[...].astype(jnp.float32)
        pos_scores = jnp.sum(xw * y, axis=1, keepdims=True)             # (tb, 1)
        neg_scores = jnp.sum(xw * yneg, axis=1, keepdims=True)          # (tb, 1)

        # Numerically-stable softplus (== torch BCEWithLogitsLoss for labels 1 / 0).
        def softplus(z):
            return jnp.maximum(z, 0.0) + jnp.log1p(jnp.exp(-jnp.abs(z)))

        out_ref[...] = softplus(-pos_scores) + softplus(neg_scores)

    return kernel


def _pick_tile(bs, feat, x_isz, y_isz, yneg_isz, w_isz, budget_bytes=40 << 20):
    """Largest power-of-two batch tile whose VMEM working set fits the budget."""
    # double-buffered streamed tiles (x, y, y_neg) + f32 xw intermediate, per row:
    row_bytes = 2 * (x_isz + y_isz + yneg_isz) * feat + 4 * feat
    # resident w block (constant index_map); conservatively count 2 pipeline buffers.
    w_bytes = 2 * w_isz * feat * feat
    tb = 1024
    while tb > 8 and w_bytes + tb * row_bytes > budget_bytes:
        tb //= 2
    if bs <= tb:
        tb = bs  # single block == full batch dim (allowed even if not a multiple of 8)
    est = w_bytes + tb * row_bytes + 2 * tb * 4
    return tb, est


def contrast_loss(x, w, y, y_neg=None, *, perm_key=None, bf16_matmul=True,
                  max_batch_tile=None):
    """Pallas ContrastLoss forward.  Returns per-example loss of shape (bs,).

    If y_neg is None a permutation of y is used; a fresh `perm_key` must be supplied
    per step (torch draws a fresh randperm every forward).
    """
    bs, feat = x.shape
    assert w.shape == (feat, feat)
    assert y.shape == (bs, feat)

    if y_neg is None:
        if perm_key is None:
            raise ValueError("y_neg is None: pass a fresh perm_key per forward "
                             "(torch.randperm equivalent).")
        idx = jax.random.permutation(perm_key, bs)
        # TODO(synk): replace with in-kernel DMA gather (scalar-prefetched idx) when
        # feat * itemsize >= ~2 KB; below that the XLA gather is cheaper.
        y_neg = jnp.take(y, idx, axis=0)
    assert y_neg.shape == (bs, feat)

    tb, est = _pick_tile(bs, feat, x.dtype.itemsize, y.dtype.itemsize,
                         y_neg.dtype.itemsize, w.dtype.itemsize)
    if max_batch_tile is not None:
        tb = min(tb, max_batch_tile)
    grid = (pl.cdiv(bs, tb),)  # ragged final block handled by Pallas; no jnp.pad pass.

    # ~2x the real working set (+ headroom), capped well below v7x's 64 MiB physical VMEM.
    vmem_limit = int(min(56 << 20, max(2 * est + (4 << 20), 8 << 20)))

    out = pl.pallas_call(
        _make_kernel(bf16_matmul),
        out_shape=jax.ShapeDtypeStruct((bs, 1), jnp.float32),
        grid=grid,
        in_specs=[
            pl.BlockSpec((tb, feat), lambda i: (i, 0)),     # x: streamed batch tiles
            pl.BlockSpec((feat, feat), lambda i: (0, 0)),   # w: VMEM-resident (const idx)
            pl.BlockSpec((tb, feat), lambda i: (i, 0)),     # y: streamed
            pl.BlockSpec((tb, feat), lambda i: (i, 0)),     # y_neg: streamed
        ],
        out_specs=pl.BlockSpec((tb, 1), lambda i: (i, 0)),
        compiler_params=pltpu.CompilerParams(
            dimension_semantics=("parallel",),
            vmem_limit_bytes=vmem_limit,
        ),
    )(x, w, y, y_neg)

    return out[:, 0]


def _reference(x, w, y, y_neg, bf16_matmul=True):
    if bf16_matmul:
        xw = jnp.dot(x.astype(jnp.bfloat16), w.astype(jnp.bfloat16),
                     preferred_element_type=jnp.float32)
    else:
        xw = jnp.dot(x.astype(jnp.float32), w.astype(jnp.float32),
                     preferred_element_type=jnp.float32,
                     precision=jax.lax.Precision.HIGHEST)
    pos = jnp.sum(xw * y.astype(jnp.float32), axis=1)
    neg = jnp.sum(xw * y_neg.astype(jnp.float32), axis=1)
    sp = lambda z: jnp.maximum(z, 0.0) + jnp.log1p(jnp.exp(-jnp.abs(z)))
    return sp(-pos) + sp(neg)


if __name__ == "__main__":
    key = jax.random.PRNGKey(0)

    # (bs, feat): single-block case and a multi-tile case exercising the ragged last block.
    for bs, feat, tile_cap in [(8, 128, None), (300, 256, 128)]:
        k_w, k_x, k_y, k_perm, key = jax.random.split(key, 5)

        # Xavier-uniform init for w (feat_size x feat_size), as in the module __init__.
        bound = (6.0 / (feat + feat)) ** 0.5
        w = jax.random.uniform(k_w, (feat, feat), jnp.float32, minval=-bound, maxval=bound)

        x = jax.random.normal(k_x, (bs, feat), jnp.float32)
        y = jax.random.normal(k_y, (bs, feat), jnp.float32)

        # Deterministic stand-in for th.randperm.
        idx = jax.random.permutation(k_perm, bs)
        y_neg = y[idx, :]
        ref = _reference(x, w, y, y_neg)

        # Explicit-y_neg path (forces a small tile on the big case to cover the ragged
        # multi-block path that replaced jnp.pad).
        loss = jax.block_until_ready(
            contrast_loss(x, w, y, y_neg, max_batch_tile=tile_cap))
        assert loss.shape == (bs,)
        assert jnp.allclose(loss, ref, atol=1e-3, rtol=1e-3), (
            "explicit", bs, feat, float(jnp.max(jnp.abs(loss - ref))))

        # y_neg=None path (wrapper permutation with an explicit, per-call key).
        loss2 = jax.block_until_ready(
            contrast_loss(x, w, y, perm_key=k_perm, max_batch_tile=tile_cap))
        assert jnp.allclose(loss2, ref, atol=1e-3, rtol=1e-3), (
            "permuted", bs, feat, float(jnp.max(jnp.abs(loss2 - ref))))

    print("KERNEL_OK")
</pallas_src>

<mosaic_0001>
module attributes {stable_mosaic.version = 11 : i64} {
  func.func @kernel(%arg0: i32, %arg1: memref<8x128xf32, #tpu.memory_space<vmem>>, %arg2: memref<128x128xf32, #tpu.memory_space<vmem>>, %arg3: memref<8x128xf32, #tpu.memory_space<vmem>>, %arg4: memref<8x128xf32, #tpu.memory_space<vmem>>, %arg5: memref<8x1xf32, #tpu.memory_space<vmem>>) attributes {dimension_semantics = [#tpu.dimension_semantics<parallel>], iteration_bounds = array<i64: 1>, scalar_prefetch = 0 : i64, scratch_operands = 0 : i64, tpu.core_type = #tpu.core_type<tc>, window_params = [{transform_indices = @transform_0, window_bounds = array<i64: 8, 128>}, {pipeline_mode = #tpu.pipeline_mode<synchronous>, transform_indices = @transform_1, window_bounds = array<i64: 128, 128>}, {transform_indices = @transform_2, window_bounds = array<i64: 8, 128>}, {transform_indices = @transform_3, window_bounds = array<i64: 8, 128>}, {transform_indices = @transform_4, window_bounds = array<i64: 8, 1>}]} {
    %c0 = arith.constant 0 : index
    %c0_0 = arith.constant 0 : index
    %0 = vector.load %arg1[%c0, %c0_0] : memref<8x128xf32, #tpu.memory_space<vmem>>, vector<8x128xf32>
    %1 = arith.truncf %0 : vector<8x128xf32> to vector<8x128xbf16>
    %c0_1 = arith.constant 0 : index
    %c0_2 = arith.constant 0 : index
    %2 = vector.load %arg2[%c0_1, %c0_2] : memref<128x128xf32, #tpu.memory_space<vmem>>, vector<128x128xf32>
    %3 = arith.truncf %2 : vector<128x128xf32> to vector<128x128xbf16>
    %cst = arith.constant dense<0.000000e+00> : vector<8x128xf32>
    %4 = tpu.matmul %1, %3, %cst {dimension_numbers = #tpu.dot_dimension_numbers<[1], [0], [0], [1], [0, 0, 1, 1], [], []>} : vector<8x128xbf16>, vector<128x128xbf16>, vector<8x128xf32> -> vector<8x128xf32>
    %c0_3 = arith.constant 0 : index
    %c0_4 = arith.constant 0 : index
    %5 = vector.load %arg3[%c0_3, %c0_4] : memref<8x128xf32, #tpu.memory_space<vmem>>, vector<8x128xf32>
    %c0_5 = arith.constant 0 : index
    %c0_6 = arith.constant 0 : index
    %6 = vector.load %arg4[%c0_5, %c0_6] : memref<8x128xf32, #tpu.memory_space<vmem>>, vector<8x128xf32>
    %7 = arith.mulf %4, %5 : vector<8x128xf32>
    %cst_7 = arith.constant dense<0.000000e+00> : vector<8xf32>
    %8 = vector.multi_reduction <add>, %7, %cst_7 [1] : vector<8x128xf32> to vector<8xf32>
    %9 = vector.shape_cast %8 : vector<8xf32> to vector<8x1xf32>
    %10 = arith.mulf %4, %6 : vector<8x128xf32>
    %cst_8 = arith.constant dense<0.000000e+00> : vector<8xf32>
    %11 = vector.multi_reduction <add>, %10, %cst_8 [1] : vector<8x128xf32> to vector<8xf32>
    %12 = vector.shape_cast %11 : vector<8xf32> to vector<8x1xf32>
    %cst_9 = arith.constant 0.000000e+00 : f32
    %13 = vector.broadcast %cst_9 : f32 to vector<8x1xf32>
    %14 = arith.subf %13, %9 : vector<8x1xf32>
    %cst_10 = arith.constant 0.000000e+00 : f32
    %15 = vector.broadcast %cst_10 : f32 to vector<8x1xf32>
    %16 = arith.maximumf %14, %15 : vector<8x1xf32>
    %17 = math.absf %14 : vector<8x1xf32>
    %cst_11 = arith.constant 0.000000e+00 : f32
    %18 = vector.broadcast %cst_11 : f32 to vector<8x1xf32>
    %19 = arith.subf %18, %17 : vector<8x1xf32>
    %20 = math.exp %19 : vector<8x1xf32>
    %21 = math.log1p %20 : vector<8x1xf32>
    %22 = arith.addf %16, %21 : vector<8x1xf32>
    %cst_12 = arith.constant 0.000000e+00 : f32
    %23 = vector.broadcast %cst_12 : f32 to vector<8x1xf32>
    %24 = arith.maximumf %12, %23 : vector<8x1xf32>
    %25 = math.absf %12 : vector<8x1xf32>
    %cst_13 = arith.constant 0.000000e+00 : f32
    %26 = vector.broadcast %cst_13 : f32 to vector<8x1xf32>
    %27 = arith.subf %26, %25 : vector<8x1xf32>
    %28 = math.exp %27 : vector<8x1xf32>
    %29 = math.log1p %28 : vector<8x1xf32>
    %30 = arith.addf %24, %29 : vector<8x1xf32>
    %31 = arith.addf %22, %30 : vector<8x1xf32>
    %c0_14 = arith.constant 0 : index
    %c0_15 = arith.constant 0 : index
    %32 = vector.load %arg5[%c0_14, %c0_15] : memref<8x1xf32, #tpu.memory_space<vmem>>, vector<8x1xf32>
    tpu.vector_store %arg5[%c0_14, %c0_15], %31 {strides = array<i32>} : memref<8x1xf32, #tpu.memory_space<vmem>>, vector<8x1xf32>,
    return
  }
  func.func @transform_0(%arg0: i32) -> (i32, i32) {
    %c0_i32 = arith.constant 0 : i32
    %c0_i32_0 = arith.constant 0 : i32
    return %arg0, %c0_i32 : i32, i32
  }
  func.func @transform_1(%arg0: i32) -> (i32, i32) {
    %c0_i32 = arith.constant 0 : i32
    %c0_i32_0 = arith.constant 0 : i32
    %c0_i32_1 = arith.constant 0 : i32
    return %c0_i32, %c0_i32_0 : i32, i32
  }
  func.func @transform_2(%arg0: i32) -> (i32, i32) {
    %c0_i32 = arith.constant 0 : i32
    %c0_i32_0 = arith.constant 0 : i32
    return %arg0, %c0_i32 : i32, i32
  }
  func.func @transform_3(%arg0: i32) -> (i32, i32) {
    %c0_i32 = arith.constant 0 : i32
    %c0_i32_0 = arith.constant 0 : i32
    return %arg0, %c0_i32 : i32, i32
  }
  func.func @transform_4(%arg0: i32) -> (i32, i32) {
    %c0_i32 = arith.constant 0 : i32
    %c0_i32_0 = arith.constant 0 : i32
    return %arg0, %c0_i32 : i32, i32
  }
}

</mosaic_0001>

<bundles_post_ra>
// kernel: tpu_custom_call.1
= control target key start
LH: loop header
LB: loop body
LE: loop exit
PB: predicated region body
PF: predicated region fallthrough
CT: control target
= control target key end

     0   :  { %9 = vsyncpa [#allocation3], 0  ;;  %s324_s0 = inlined_call_operand.hbm [shape: f32[8,128], index: 0, kind: input, shape index: {}]   ;;  %s325_s1 = inlined_call_operand.hbm [shape: f32[128,128], index: 1, kind: input, shape index: {}]   ;;  %s326_s2 = inlined_call_operand.hbm [shape: f32[8,128], index: 2, kind: input, shape index: {}]   ;;  %s327_s3 = inlined_call_operand.hbm [shape: f32[8,128], index: 3, kind: input, shape index: {}]   ;;  %s328_s4 = inlined_call_operand.vmem [shape: f32[8,1], index: 4, kind: output, shape index: {}]  }
   0x1   :  { %10 = vsyncpa [#allocation5], 0  ;;  %s27_s17 = sshll.u32 %s325_s1, 4  ;;  %s28_s17 = int_to_ptr.hbm [resolvable:$true] %s27_s17 }
   0x2   :  { %11 = vsyncpa [#allocation8], 0  ;;  %s278_s18 = smov [#allocation4]   ;;  %s17_s22 = sshll.u32 %s324_s0, 4  ;;  %s18_s22 = int_to_ptr.hbm [resolvable:$true] %s17_s22 }
   0x3   :  { %s29_s19 = sshll.u32 %s278_s18, 4  ;;  %s279_s23 = smov 128   ;;  %s30_s19 = int_to_ptr.vmem [resolvable:$true] %s29_s19 }
   0x4   :  { %s280_s24 = smov 8   ;;  %s281_s25 = smov [#allocation2]  }
   0x5   :  { %35 = dma.hbm_to_vmem [thread:$0]  %s28_s17, 2048, %s30_s19, [#allocation5], %s279_s23, %s279_s23, %s280_s24  }
   0x6   :  { %s19_s26 = sshll.u32 %s281_s25, 4  ;;  %s41_s29 = sshll.u32 %s326_s2, 4  ;;  %s20_s26 = int_to_ptr.vmem [resolvable:$true] %s19_s26  ;;  %s42_s29 = int_to_ptr.hbm [resolvable:$true] %s41_s29 }
   0x7   :  { %22 = dma.hbm_to_vmem [thread:$0]  %s18_s22, 128, %s20_s26, [#allocation3]  }
   0x8   :  { %s52_s5 = sshll.u32 %s327_s3, 4  ;;  %s282_s6 = smov [#allocation6]   ;;  %s53_s5 = int_to_ptr.hbm [resolvable:$true] %s52_s5 }
   0x9   :  { %s43_s7 = sshll.u32 %s282_s6, 4  ;;  %s283_s0 = smov [#allocation7]   ;;  %s44_s7 = int_to_ptr.vmem [resolvable:$true] %s43_s7 }
   0xa   :  { %46 = dma.hbm_to_vmem [thread:$0]  %s42_s29, 128, %s44_s7, [#allocation5]  }
   0xb   :  { %s54_s8 = sshll.u32 %s283_s0, 4  ;;  %s55_s8 = int_to_ptr.vmem [resolvable:$true] %s54_s8 }
   0xc   :  { %57 = dma.hbm_to_vmem [thread:$0]  %s53_s5, 128, %s55_s8, [#allocation8]  }
   0xd   :  { %272 = dma.done.wait [#allocation3], 128  }
   0xe   :  { %273 = vsyncadd [#allocation3], 4294967168 }
   0xf   :  { %274 = dma.done.wait [#allocation5], 2176  }
  0x10   :  { %275 = vsyncadd [#allocation5], 4294965120 }
  0x11   :  { %276 = dma.done.wait [#allocation8], 128  }
  0x12   :  { %277 = vsyncadd [#allocation8], 4294967168  ;;  %v90_v0 = vld [vmem:[#allocation4 + $0x70] sm:$0xff]  ;;  %v91_v1 = vld [vmem:[#allocation4 + $0x78] sm:$0xff]  ;;  %vm153_vm2 = vcmask 7168  }
  0x13   :  { %v88_v2 = vld [vmem:[#allocation4 + $0x60] sm:$0xff]  ;;  %v99_v3 = vpack.c.bf16 %v91_v1, %v90_v0  ;;  %v89_v4 = vld [vmem:[#allocation4 + $0x68] sm:$0xff]  ;;  %v86_v6 = vld [vmem:[#allocation4 + $0x50] sm:$0xff] }
  0x14   :  { %v98_v5 = vpack.c.bf16 %v89_v4, %v88_v2  ;;  %v87_v7 = vld [vmem:[#allocation4 + $0x58] sm:$0xff]  ;;  %v84_v9 = vld [vmem:[#allocation4 + $0x40] sm:$0xff]  ;;  %v85_v10 = vld [vmem:[#allocation4 + $0x48] sm:$0xff] }
  0x15   :  { %100 = vmatpush.bf16.msra.mxu0 %v99_v3  ;;  %v97_v8 = vpack.c.bf16 %v87_v7, %v86_v6  ;;  %v96_v11 = vpack.c.bf16 %v85_v10, %v84_v9  ;;  %v82_v12 = vld [vmem:[#allocation4 + $0x30] sm:$0xff]  ;;  %v83_v13 = vld [vmem:[#allocation4 + $0x38] sm:$0xff]  ;;  %v80_v15 = vld [vmem:[#allocation4 + $0x20] sm:$0xff] }
  0x16   :  { %v95_v14 = vpack.c.bf16 %v83_v13, %v82_v12  ;;  %v81_v16 = vld [vmem:[#allocation4 + $0x28] sm:$0xff]  ;;  %v78_v18 = vld [vmem:[#allocation4 + $0x10] sm:$0xff]  ;;  %v79_v19 = vld [vmem:[#allocation4 + $0x18] sm:$0xff] }
  0x17   :  { %v94_v17 = vpack.c.bf16 %v81_v16, %v80_v15  ;;  %v93_v20 = vpack.c.bf16 %v79_v19, %v78_v18  ;;  %v76_v21 = vld [vmem:[#allocation4] sm:$0xff]  ;;  %v77_v22 = vld [vmem:[#allocation4 + $0x8] sm:$0xff]  ;;  %v74_v24 = vld [vmem:[#allocation2] sm:$0xff] }
  0x18   :  { %v92_v23 = vpack.c.bf16 %v77_v22, %v76_v21  ;;  %v75_v25 = vpack.c.bf16 %v74_v24, %v74_v24  ;;  %v113_v26 = vld [vmem:[#allocation6] sm:$0xff]  ;;  %v114_v29 = vld [vmem:[#allocation7] sm:$0xff] }
  0x19   :  { %101 = vmatpush.bf16.msra.mxu0 %v98_v5 }
  0x1d   :  { %102 = vmatpush.bf16.msra.mxu0 %v97_v8 }
  0x21   :  { %103 = vmatpush.bf16.msra.mxu0 %v96_v11 }
  0x25   :  { %104 = vmatpush.bf16.msra.mxu0 %v95_v14 }
  0x29   :  { %105 = vmatpush.bf16.msra.mxu0 %v94_v17 }
  0x2d   :  { %106 = vmatpush.bf16.msra.mxu0 %v93_v20 }
  0x31   :  { %107 = vmatpush.bf16.msra.mxu0 %v92_v23 }
  0x34   :  { %108 = vmatmul.bf16.vlgmr.msra.gmra.mxu0 %v75_v25 }
  0xb1   :  { %v109_v27 = vpop.f32.mrf.mxu0 }
  0xb2   :  { %v115_v28 = vmul.f32 %v113_v26, %v109_v27  ;;  %v118_v31 = vmul.f32 %v114_v29, %v109_v27 }
  0xb4   :  { %116 = vadd.xlane.f32.xlu0 %v115_v28 }
  0xb9   :  { %v111_v30 = vpop.f32.mrf.mxu0 }
  0xbc   :  { %119 = vadd.xlane.f32.xlu0 %v118_v31 }
 0x127   :  { %v117_v32 = vpop.xlane.xlu0 %116 }
 0x128   :  { %v121_v33 = vsub.f32 0.0, %v117_v32 }
 0x12a   :  { %v123_v34 = vand.u32 2147483647, %v121_v33  ;;  %v122_v58 = vmax.f32 %v121_v33, 0.0 }
 0x12c   :  { %v124_v35 = vsub.f32 0.0, %v123_v34 }
 0x12e   :  { %v125_v36 = vmul.f32 1.442695, %v124_v35 }
 0x12f   :  { %v120_v37 = vpop.xlane.xlu0 %119 }
 0x130   :  { %168 = vpow2.f32 %v125_v36  ;;  %v138_v38 = vand.u32 2147483647, %v120_v37  ;;  %v137_v59 = vmax.f32 %v120_v37, 0.0 }
 0x132   :  { %v139_v39 = vsub.f32 0.0, %v138_v38 }
 0x134   :  { %v140_v40 = vmul.f32 1.442695, %v139_v39 }
 0x136   :  { %v169_v41 = vpop.eup %168  ;;  %170 = vpow2.f32 %v140_v40 }
 0x137   :  { %v127_v42 = vadd.f32 1.0, %v169_v41  ;;  %v130_v44 = vmul.f32 -0.5, %v169_v41  ;;  %v133_v49 = vand.u32 2147483647, %v169_v41 }
 0x139   :  { %172 = vlog2.f32 %v127_v42  ;;  %v131_v48 = vadd.f32 1.0, %v130_v44  ;;  %vm134_vm0 = vcmp.lt.f32.partialorder %v133_v49, 0.0004427343 }
 0x13b   :  { %v132_v53 = vmul.f32 %v169_v41, %v131_v48 }
 0x13c   :  { %v171_v43 = vpop.eup %170 }
 0x13d   :  { %v142_v45 = vadd.f32 1.0, %v171_v43  ;;  %v145_v46 = vmul.f32 -0.5, %v171_v43  ;;  %v148_v52 = vand.u32 2147483647, %v171_v43 }
 0x13f   :  { %v173_v47 = vpop.eup %172  ;;  %174 = vlog2.f32 %v142_v45  ;;  %v146_v51 = vadd.f32 1.0, %v145_v46  ;;  %vm149_vm1 = vcmp.lt.f32.partialorder %v148_v52, 0.0004427343 }
 0x140   :  { %v129_v50 = vmul.f32 0.6931472, %v173_v47 }
 0x141   :  { %v147_v57 = vmul.f32 %v171_v43, %v146_v51 }
 0x142   :  { %v135_v55 = vsel %vm134_vm0, %v132_v53, %v129_v50 }
 0x143   :  { %v136_v61 = vadd.f32 %v135_v55, %v122_v58 }
 0x145   :  { %v175_v54 = vpop.eup %174 }
 0x146   :  { %v144_v56 = vmul.f32 0.6931472, %v175_v54 }
 0x148   :  { %v150_v60 = vsel %vm149_vm1, %v147_v57, %v144_v56 }
 0x149   :  { %v151_v62 = vadd.f32 %v150_v60, %v137_v59 }
 0x14b   :  { %v152_v63 = vadd.f32 %v151_v62, %v136_v61 }
 0x14d   :  { %154 = vst.msk [vmem:[%s328_s4] sm:$0xff] %vm153_vm2, %v152_v63 }
 0x14e   :  { %159 = vsyncpa [#allocation3], 1 }
 0x14f   :  { %160 = vsyncpa [#allocation5], 1 }
 0x150   :  { %161 = vsyncpa [#allocation8], 1 }

</bundles_post_ra>
